<compile_context>
chip_gen: v7x
topology: tpu7x:2x2x1
jax: 0.10.0
libtpu: 0.0.40
codegen_flags: <defaults>
</compile_context>

<pallas_src>
import jax
import jax.numpy as jnp
from jax.experimental import pallas as pl
from jax.experimental.pallas import tpu as pltpu

_W3_PAD = 128  # last layer's N padded to one lane-width so the MXU matmul is dense


def discriminator_kernel(z_ref, w1_ref, b1_ref, w2_ref, b2_ref, w3_ref, b3_ref,
                         out_ref):
    mm_dtype = w1_ref.dtype
    # In-kernel cast of the activations; weights already arrive in mm_dtype.
    z = z_ref[...].astype(mm_dtype)

    # ---- Linear(latent_dim, 512) + LeakyReLU(0.2) ----  (f32 accumulation)
    h1 = jnp.dot(z, w1_ref[...], preferred_element_type=jnp.float32) + b1_ref[...]
    h1 = jnp.where(h1 > 0, h1, 0.2 * h1).astype(w2_ref.dtype)  # drop f32 copy now

    # ---- Linear(512, 256) + LeakyReLU(0.2) ----
    h2 = jnp.dot(h1, w2_ref[...], preferred_element_type=jnp.float32) + b2_ref[...]
    h2 = jnp.where(h2 > 0, h2, 0.2 * h2).astype(w3_ref.dtype)

    # ---- Linear(256, 1) + Sigmoid ----
    # W3 is zero-padded to 128 cols (lane-dense MXU); real logit is column 0.
    h3 = jnp.dot(h2, w3_ref[...], preferred_element_type=jnp.float32)
    logit = h3[:, 0:1] + b3_ref[...]          # (tb, 1) + (1, 1)
    out_ref[...] = jax.nn.sigmoid(logit).astype(out_ref.dtype)


def prepare_params(params, *, use_bf16=True):
    """One-time parameter prep: cast weights to the matmul dtype, pad W3 to a
    lane-dense 128-wide output, keep biases as f32 rows.  Hoisted out of the
    per-call path so the forward does no wrapper-side work on invariant data."""
    w1, b1, w2, b2, w3, b3 = params
    mm_dtype = jnp.bfloat16 if use_bf16 else jnp.float32
    h2 = w2.shape[1]
    w3p = jnp.zeros((h2, _W3_PAD), mm_dtype).at[:, : w3.shape[1]].set(
        w3.astype(mm_dtype))
    return (w1.astype(mm_dtype),
            b1.astype(jnp.float32).reshape(1, -1),
            w2.astype(mm_dtype),
            b2.astype(jnp.float32).reshape(1, -1),
            w3p,
            b3.astype(jnp.float32).reshape(1, 1))


def _num_tensorcores():
    """Best-effort TensorCore count (2 on v7x, 1 on v5e/v6e).  Defaults to 1."""
    try:
        info = pltpu.get_tpu_info()
        for name in ("num_cores", "tensorcore_count", "num_tensorcores",
                     "cores_per_chip"):
            n = getattr(info, name, None)
            if n:
                return int(n)
    except Exception:
        pass
    return 1


def _pick_tb(batch, max_tb, num_cores=1):
    """Batch tile: as large as allowed, a multiple of 8 (or == batch).  Only
    force >= num_cores grid steps when the chip actually has >1 TensorCore."""
    tb = min(max_tb, batch)
    if tb >= 8:
        tb = (tb // 8) * 8
    if num_cores > 1 and batch > 8 and pl.cdiv(batch, tb) < num_cores:
        per_core = pl.cdiv(batch, num_cores)
        tb = max(8, ((per_core + 7) // 8) * 8)
    return max(1, tb)


def discriminator_forward(z, prepared_params, *, max_tb=2048):
    """z: (B, latent_dim) float32 -> validity: (B, 1) float32."""
    w1, b1, w2, b2, w3p, b3 = prepared_params
    B, L = z.shape
    H1, H2 = w1.shape[1], w2.shape[1]
    NP = w3p.shape[1]

    tb = _pick_tb(B, max_tb, _num_tensorcores())
    grid = (pl.cdiv(B, tb),)

    # Large tiles need headroom above v5e's 16 MiB default scoped VMEM.
    vmem_limit = 32 * 1024 * 1024 if tb >= 1024 else None

    cost = pl.CostEstimate(
        flops=2 * B * (L * H1 + H1 * H2 + H2 * NP),
        transcendentals=B,
        bytes_accessed=(z.size * z.dtype.itemsize
                        + w1.size * w1.dtype.itemsize
                        + w2.size * w2.dtype.itemsize
                        + w3p.size * w3p.dtype.itemsize
                        + (b1.size + b2.size + b3.size) * 4
                        + B * 4),
    )

    out = pl.pallas_call(
        discriminator_kernel,
        out_shape=jax.ShapeDtypeStruct((B, 1), jnp.float32),
        grid_spec=pltpu.PrefetchScalarGridSpec(
            num_scalar_prefetch=0,
            grid=grid,
            in_specs=[
                pl.BlockSpec((tb, L), lambda i: (i, 0)),       # z tile (f32)
                pl.BlockSpec((L, H1), lambda i: (0, 0)),       # W1
                pl.BlockSpec((1, H1), lambda i: (0, 0)),       # b1
                pl.BlockSpec((H1, H2), lambda i: (0, 0)),      # W2
                pl.BlockSpec((1, H2), lambda i: (0, 0)),       # b2
                pl.BlockSpec((H2, NP), lambda i: (0, 0)),      # W3 (padded)
                pl.BlockSpec((1, 1), lambda i: (0, 0)),        # b3
            ],
            out_specs=pl.BlockSpec((tb, 1), lambda i: (i, 0)),
        ),
        compiler_params=pltpu.CompilerParams(
            dimension_semantics=("parallel",),
            vmem_limit_bytes=vmem_limit),
        cost_estimate=cost,
    )(z, w1, b1, w2, b2, w3p, b3)

    return out


def init_params(key, latent_dim, dtype=jnp.float32):
    """Deterministic synthetic init (uniform, roughly matching nn.Linear scale)."""
    ks = jax.random.split(key, 6)

    def lin(kw, kb, fan_in, fan_out):
        bound = 1.0 / jnp.sqrt(fan_in)
        w = jax.random.uniform(kw, (fan_in, fan_out), dtype, -bound, bound)
        b = jax.random.uniform(kb, (1, fan_out), dtype, -bound, bound)
        return w, b

    w1, b1 = lin(ks[0], ks[1], latent_dim, 512)
    w2, b2 = lin(ks[2], ks[3], 512, 256)
    w3, b3 = lin(ks[4], ks[5], 256, 1)
    return (w1, b1, w2, b2, w3, b3)


def reference_forward(z, params):
    w1, b1, w2, b2, w3, b3 = params
    h = z @ w1 + b1
    h = jnp.where(h > 0, h, 0.2 * h)
    h = h @ w2 + b2
    h = jnp.where(h > 0, h, 0.2 * h)
    h = h @ w3 + b3
    return jax.nn.sigmoid(h)


if __name__ == "__main__":
    key = jax.random.PRNGKey(0)
    k_z, k_p, k_z2 = jax.random.split(key, 3)

    latent_dim = 32
    raw_params = init_params(k_p, latent_dim)

    # Parameter prep is a one-time cost (hoisted out of the forward path).
    params_f32 = prepare_params(raw_params, use_bf16=False)
    params_bf16 = prepare_params(raw_params, use_bf16=True)

    # Primary check (small batch, single grid step), exact-f32 path.
    z = jax.random.normal(k_z, (8, latent_dim), dtype=jnp.float32)
    ref = reference_forward(z, raw_params)

    out_f32 = jax.block_until_ready(discriminator_forward(z, params_f32))
    assert out_f32.shape == (8, 1)
    assert jnp.allclose(out_f32, ref, atol=1e-5, rtol=1e-5), "f32 mismatch"

    # bf16-matmul path (default), looser tolerance (f32 accumulation kept).
    out_bf16 = jax.block_until_ready(discriminator_forward(z, params_bf16))
    assert out_bf16.shape == (8, 1)
    assert jnp.allclose(out_bf16, ref, atol=2e-2, rtol=2e-2), "bf16 mismatch"

    # Multi-step grid with a partial last tile (48 rows, tb=32 -> tiles 32+16).
    z2 = jax.random.normal(k_z2, (48, latent_dim), dtype=jnp.float32)
    ref2 = reference_forward(z2, raw_params)
    out2 = jax.block_until_ready(
        discriminator_forward(z2, params_f32, max_tb=32))
    assert out2.shape == (48, 1)
    assert jnp.allclose(out2, ref2, atol=1e-5, rtol=1e-5), "multi-tile mismatch"

    print("KERNEL_OK")
</pallas_src>

<mosaic_0001>
module attributes {stable_mosaic.version = 11 : i64} {
  func.func @discriminator_kernel(%arg0: i32, %arg1: memref<8x32xf32, #tpu.memory_space<vmem>>, %arg2: memref<32x512xf32, #tpu.memory_space<vmem>>, %arg3: memref<1x512xf32, #tpu.memory_space<vmem>>, %arg4: memref<512x256xf32, #tpu.memory_space<vmem>>, %arg5: memref<1x256xf32, #tpu.memory_space<vmem>>, %arg6: memref<256x128xf32, #tpu.memory_space<vmem>>, %arg7: memref<1x1xf32, #tpu.memory_space<vmem>>, %arg8: memref<8x1xf32, #tpu.memory_space<vmem>>) attributes {dimension_semantics = [#tpu.dimension_semantics<parallel>], iteration_bounds = array<i64: 1>, scalar_prefetch = 0 : i64, scratch_operands = 0 : i64, tpu.core_type = #tpu.core_type<tc>, window_params = [{transform_indices = @transform_0, window_bounds = array<i64: 8, 32>}, {pipeline_mode = #tpu.pipeline_mode<synchronous>, transform_indices = @transform_1, window_bounds = array<i64: 32, 512>}, {pipeline_mode = #tpu.pipeline_mode<synchronous>, transform_indices = @transform_2, window_bounds = array<i64: 1, 512>}, {pipeline_mode = #tpu.pipeline_mode<synchronous>, transform_indices = @transform_3, window_bounds = array<i64: 512, 256>}, {pipeline_mode = #tpu.pipeline_mode<synchronous>, transform_indices = @transform_4, window_bounds = array<i64: 1, 256>}, {pipeline_mode = #tpu.pipeline_mode<synchronous>, transform_indices = @transform_5, window_bounds = array<i64: 256, 128>}, {pipeline_mode = #tpu.pipeline_mode<synchronous>, transform_indices = @transform_6, window_bounds = array<i64: 1, 1>}, {transform_indices = @transform_7, window_bounds = array<i64: 8, 1>}]} {
    %c0 = arith.constant 0 : index
    %c0_0 = arith.constant 0 : index
    %0 = vector.load %arg1[%c0, %c0_0] : memref<8x32xf32, #tpu.memory_space<vmem>>, vector<8x32xf32>
    %c0_1 = arith.constant 0 : index
    %c0_2 = arith.constant 0 : index
    %1 = vector.load %arg2[%c0_1, %c0_2] : memref<32x512xf32, #tpu.memory_space<vmem>>, vector<32x512xf32>
    %cst = arith.constant dense<0.000000e+00> : vector<8x512xf32>
    %2 = tpu.matmul %0, %1, %cst {dimension_numbers = #tpu.dot_dimension_numbers<[1], [0], [0], [1], [0, 0, 1, 1], [], []>} : vector<8x32xf32>, vector<32x512xf32>, vector<8x512xf32> -> vector<8x512xf32>
    %c0_3 = arith.constant 0 : index
    %c0_4 = arith.constant 0 : index
    %3 = vector.load %arg3[%c0_3, %c0_4] : memref<1x512xf32, #tpu.memory_space<vmem>>, vector<1x512xf32>
    %4 = vector.broadcast %3 : vector<1x512xf32> to vector<8x512xf32>
    %5 = arith.addf %2, %4 : vector<8x512xf32>
    %cst_5 = arith.constant 0.000000e+00 : f32
    %6 = vector.broadcast %cst_5 : f32 to vector<8x512xf32>
    %7 = arith.cmpf ogt, %5, %6 : vector<8x512xf32>
    %cst_6 = arith.constant 2.000000e-01 : f32
    %8 = vector.broadcast %cst_6 : f32 to vector<8x512xf32>
    %9 = arith.mulf %8, %5 : vector<8x512xf32>
    %10 = arith.select %7, %5, %9 : vector<8x512xi1>, vector<8x512xf32>
    %c0_7 = arith.constant 0 : index
    %c0_8 = arith.constant 0 : index
    %11 = vector.load %arg4[%c0_7, %c0_8] : memref<512x256xf32, #tpu.memory_space<vmem>>, vector<512x256xf32>
    %cst_9 = arith.constant dense<0.000000e+00> : vector<8x256xf32>
    %12 = tpu.matmul %10, %11, %cst_9 {dimension_numbers = #tpu.dot_dimension_numbers<[1], [0], [0], [1], [0, 0, 1, 1], [], []>} : vector<8x512xf32>, vector<512x256xf32>, vector<8x256xf32> -> vector<8x256xf32>
    %c0_10 = arith.constant 0 : index
    %c0_11 = arith.constant 0 : index
    %13 = vector.load %arg5[%c0_10, %c0_11] : memref<1x256xf32, #tpu.memory_space<vmem>>, vector<1x256xf32>
    %14 = vector.broadcast %13 : vector<1x256xf32> to vector<8x256xf32>
    %15 = arith.addf %12, %14 : vector<8x256xf32>
    %cst_12 = arith.constant 0.000000e+00 : f32
    %16 = vector.broadcast %cst_12 : f32 to vector<8x256xf32>
    %17 = arith.cmpf ogt, %15, %16 : vector<8x256xf32>
    %cst_13 = arith.constant 2.000000e-01 : f32
    %18 = vector.broadcast %cst_13 : f32 to vector<8x256xf32>
    %19 = arith.mulf %18, %15 : vector<8x256xf32>
    %20 = arith.select %17, %15, %19 : vector<8x256xi1>, vector<8x256xf32>
    %c0_14 = arith.constant 0 : index
    %c0_15 = arith.constant 0 : index
    %21 = vector.load %arg6[%c0_14, %c0_15] : memref<256x128xf32, #tpu.memory_space<vmem>>, vector<256x128xf32>
    %cst_16 = arith.constant dense<0.000000e+00> : vector<8x128xf32>
    %22 = tpu.matmul %20, %21, %cst_16 {dimension_numbers = #tpu.dot_dimension_numbers<[1], [0], [0], [1], [0, 0, 1, 1], [], []>} : vector<8x256xf32>, vector<256x128xf32>, vector<8x128xf32> -> vector<8x128xf32>
    %23 = vector.extract_strided_slice %22 {offsets = [0, 0], sizes = [8, 1], strides = [1, 1]} : vector<8x128xf32> to vector<8x1xf32>
    %c0_17 = arith.constant 0 : index
    %c0_18 = arith.constant 0 : index
    %24 = vector.load %arg7[%c0_17, %c0_18] : memref<1x1xf32, #tpu.memory_space<vmem>>, vector<1x1xf32>
    %25 = vector.broadcast %24 : vector<1x1xf32> to vector<8x1xf32>
    %26 = arith.addf %23, %25 : vector<8x1xf32>
    %27 = arith.negf %26 : vector<8x1xf32>
    %28 = math.exp %27 : vector<8x1xf32>
    %cst_19 = arith.constant 1.000000e+00 : f32
    %29 = vector.broadcast %cst_19 : f32 to vector<8x1xf32>
    %30 = arith.addf %29, %28 : vector<8x1xf32>
    %31 = arith.divf %29, %30 : vector<8x1xf32>
    %c0_20 = arith.constant 0 : index
    %c0_21 = arith.constant 0 : index
    %32 = vector.load %arg8[%c0_20, %c0_21] : memref<8x1xf32, #tpu.memory_space<vmem>>, vector<8x1xf32>
    tpu.vector_store %arg8[%c0_20, %c0_21], %31 {strides = array<i32>} : memref<8x1xf32, #tpu.memory_space<vmem>>, vector<8x1xf32>,
    return
  }
  func.func @transform_0(%arg0: i32) -> (i32, i32) {
    %c0_i32 = arith.constant 0 : i32
    %c0_i32_0 = arith.constant 0 : i32
    return %arg0, %c0_i32 : i32, i32
  }
  func.func @transform_1(%arg0: i32) -> (i32, i32) {
    %c0_i32 = arith.constant 0 : i32
    %c0_i32_0 = arith.constant 0 : i32
    %c0_i32_1 = arith.constant 0 : i32
    return %c0_i32, %c0_i32_0 : i32, i32
  }
  func.func @transform_2(%arg0: i32) -> (i32, i32) {
    %c0_i32 = arith.constant 0 : i32
    %c0_i32_0 = arith.constant 0 : i32
    %c0_i32_1 = arith.constant 0 : i32
    return %c0_i32, %c0_i32_0 : i32, i32
  }
  func.func @transform_3(%arg0: i32) -> (i32, i32) {
    %c0_i32 = arith.constant 0 : i32
    %c0_i32_0 = arith.constant 0 : i32
    %c0_i32_1 = arith.constant 0 : i32
    return %c0_i32, %c0_i32_0 : i32, i32
  }
  func.func @transform_4(%arg0: i32) -> (i32, i32) {
    %c0_i32 = arith.constant 0 : i32
    %c0_i32_0 = arith.constant 0 : i32
    %c0_i32_1 = arith.constant 0 : i32
    return %c0_i32, %c0_i32_0 : i32, i32
  }
  func.func @transform_5(%arg0: i32) -> (i32, i32) {
    %c0_i32 = arith.constant 0 : i32
    %c0_i32_0 = arith.constant 0 : i32
    %c0_i32_1 = arith.constant 0 : i32
    return %c0_i32, %c0_i32_0 : i32, i32
  }
  func.func @transform_6(%arg0: i32) -> (i32, i32) {
    %c0_i32 = arith.constant 0 : i32
    %c0_i32_0 = arith.constant 0 : i32
    %c0_i32_1 = arith.constant 0 : i32
    return %c0_i32, %c0_i32_0 : i32, i32
  }
  func.func @transform_7(%arg0: i32) -> (i32, i32) {
    %c0_i32 = arith.constant 0 : i32
    %c0_i32_0 = arith.constant 0 : i32
    return %arg0, %c0_i32 : i32, i32
  }
}

</mosaic_0001>

<bundles_post_ra>
// kernel: tpu_custom_call.1
= control target key start
LH: loop header
LB: loop body
LE: loop exit
PB: predicated region body
PF: predicated region fallthrough
CT: control target
= control target key end

     0   :  { %s1146_s0 = inlined_call_operand.hbm [shape: f32[8,32], index: 0, kind: input, shape index: {}]   ;;  %s1147_s1 = inlined_call_operand.hbm [shape: f32[32,512], index: 1, kind: input, shape index: {}]   ;;  %s1148_s2 = inlined_call_operand.vmem [shape: f32[1,512], index: 2, kind: input, shape index: {}]   ;;  %s1149_s3 = inlined_call_operand.hbm [shape: f32[512,256], index: 3, kind: input, shape index: {}]   ;;  %s1150_s4 = inlined_call_operand.vmem [shape: f32[1,256], index: 4, kind: input, shape index: {}]   ;;  %s1151_s5 = inlined_call_operand.hbm [shape: f32[256,128], index: 5, kind: input, shape index: {}]   ;;  %s1152_s6 = inlined_call_operand.<no memory space> [shape: f32[1,1], index: 6, kind: input, shape index: {}]   ;;  %s1153_s7 = inlined_call_operand.vmem [shape: f32[8,1], index: 7, kind: output, shape index: {}]  }
   0x1   :  { %v12_v0 = vstv %s1152_s6 }
   0x2   :  { %13 = vst [vmem:[#allocation2] sm:$0x1] %v12_v0 }
   0x3   :  { %14 = vsyncpa [#allocation4], 0 }
   0x4   :  { %15 = vsyncpa [#allocation6], 0 }
   0x5   :  { %16 = vsyncpa [#allocation9], 0  ;;  %s1019_s26 = smov [#allocation5]   ;;  %s925_s30 = scalar_lea.hbm %s1147_s1, 2048 }
   0x6   :  { %s32_s27 = sshll.u32 %s1019_s26, 4  ;;  %p926_p0 = scmp.ne.s32.totalorder %s1147_s1, %s925_s30  ;;  %s33_s27 = int_to_ptr.vmem [resolvable:$true] %s32_s27 }
   0x7   :  { %p929_p1 = scmp.lt.u32.totalorder %s925_s30, %s1147_s1 }
   0x9   :  { %p931_p2 = pnand %p929_p1, %p926_p0 }
   0xb   :  { %934 = shalt.err (!%p931_p2)
}
   0xc   :  { %s935_s6 = scalar_lea.vmem %s33_s27, 2048  ;;  %p940_p4 = scmp.lt.s32.totalorder %s33_s27, %s33_s27 }
   0xd   :  { %p936_p3 = scmp.ne.s32.totalorder %s33_s27, %s935_s6  ;;  %p941_p5 = scmp.lt.s32.totalorder %s935_s6, %s935_s6 }
   0xf   :  { %p942_p6 = por %p941_p5, %p940_p4 }
  0x11   :  { %p943_p7 = pnand %p942_p6, %p936_p3 }
  0x13   :  { %946 = shalt.err (!%p943_p7)
}
  0x14   :  { %s1020_s12 = smov 512   ;;  %s1021_s13 = smov 32  }
  0x15   :  { %38 = dma.hbm_to_vmem [thread:$0]  %s1147_s1, 2048, %s33_s27, [#allocation6], %s1020_s12, %s1020_s12, %s1021_s13  }
  0x16   :  { %s1022_s16 = smov [#allocation3]   ;;  %s1023_s18 = smov [#allocation7]  }
  0x17   :  { %s23_s17 = sshll.u32 %s1022_s16, 4  ;;  %s46_s19 = sshll.u32 %s1023_s18, 4  ;;  %s24_s17 = int_to_ptr.vmem [resolvable:$true] %s23_s17  ;;  %s47_s19 = int_to_ptr.vmem [resolvable:$true] %s46_s19 }
  0x18   :  { %s947_s22 = scalar_lea.hbm %s1146_s0, 128 }
  0x19   :  { %p948_p8 = scmp.ne.s32.totalorder %s1146_s0, %s947_s22  ;;  %p951_p9 = scmp.lt.u32.totalorder %s947_s22, %s1146_s0 }
  0x1b   :  { %p953_p10 = pnand %p951_p9, %p948_p8 }
  0x1d   :  { %956 = shalt.err (!%p953_p10)
}
  0x1e   :  { %s957_s1 = scalar_lea.vmem %s24_s17, 128  ;;  %p962_p12 = scmp.lt.s32.totalorder %s24_s17, %s24_s17 }
  0x1f   :  { %p958_p11 = scmp.ne.s32.totalorder %s24_s17, %s957_s1  ;;  %p963_p13 = scmp.lt.s32.totalorder %s957_s1, %s957_s1 }
  0x21   :  { %p964_p0 = por %p963_p13, %p962_p12 }
  0x23   :  { %p965_p1 = pnand %p964_p0, %p958_p11 }
  0x25   :  { %968 = shalt.err (!%p965_p1)
}
  0x26   :  { %26 = dma.hbm_to_vmem [thread:$0]  %s1146_s0, 128, %s24_s17, [#allocation4]  }
  0x27   :  { %s969_s8 = scalar_lea.hbm %s1149_s3, 16384 }
  0x28   :  { %p970_p2 = scmp.ne.s32.totalorder %s1149_s3, %s969_s8  ;;  %p973_p3 = scmp.lt.u32.totalorder %s969_s8, %s1149_s3 }
  0x2a   :  { %p975_p4 = pnand %p973_p3, %p970_p2 }
  0x2c   :  { %978 = shalt.err (!%p975_p4)
}
  0x2d   :  { %s979_s12 = scalar_lea.vmem %s47_s19, 16384  ;;  %p984_p6 = scmp.lt.s32.totalorder %s47_s19, %s47_s19 }
  0x2e   :  { %p980_p5 = scmp.ne.s32.totalorder %s47_s19, %s979_s12  ;;  %p985_p7 = scmp.lt.s32.totalorder %s979_s12, %s979_s12 }
  0x30   :  { %p986_p8 = por %p985_p7, %p984_p6 }
  0x32   :  { %p987_p9 = pnand %p986_p8, %p980_p5 }
  0x34   :  { %990 = shalt.err (!%p987_p9)
}
  0x35   :  { %s1024_s0 = smov 256   ;;  %s1025_s13 = smov 16  }
  0x36   :  { %52 = dma.hbm_to_vmem [thread:$0]  %s1149_s3, 16384, %s47_s19, [#allocation6], %s1024_s0, %s1024_s0, %s1025_s13  }
  0x37   :  { %s1026_s16 = smov [#allocation8]   ;;  %s991_s21 = scalar_lea.hbm %s1151_s5, 4096 }
  0x38   :  { %s60_s17 = sshll.u32 %s1026_s16, 4  ;;  %p992_p10 = scmp.ne.s32.totalorder %s1151_s5, %s991_s21  ;;  %s61_s17 = int_to_ptr.vmem [resolvable:$true] %s60_s17 }
  0x39   :  { %p995_p11 = scmp.lt.u32.totalorder %s991_s21, %s1151_s5 }
  0x3b   :  { %p997_p12 = pnand %p995_p11, %p992_p10 }
  0x3d   :  { %1000 = shalt.err (!%p997_p12)
}
  0x3e   :  { %s1001_s26 = scalar_lea.vmem %s61_s17, 4096  ;;  %p1006_p0 = scmp.lt.s32.totalorder %s61_s17, %s61_s17 }
  0x3f   :  { %p1002_p13 = scmp.ne.s32.totalorder %s61_s17, %s1001_s26  ;;  %p1007_p1 = scmp.lt.s32.totalorder %s1001_s26, %s1001_s26 }
  0x41   :  { %p1008_p2 = por %p1007_p1, %p1006_p0 }
  0x43   :  { %p1009_p3 = pnand %p1008_p2, %p1002_p13 }
  0x45   :  { %1012 = shalt.err (!%p1009_p3)
}
  0x46   :  { %s1027_s3 = smov 128   ;;  %s1028_s19 = smov 8  }
  0x47   :  { %66 = dma.hbm_to_vmem [thread:$0]  %s1151_s5, 4096, %s61_s17, [#allocation9], %s1027_s3, %s1027_s3, %s1028_s19  }
  0x48   :  { %1013 = dma.done.wait [#allocation4], 128  }
  0x49   :  { %1014 = vsyncadd [#allocation4], 4294967168 }
  0x4a   :  { %1015 = dma.done.wait [#allocation6], 18432  }
  0x4b   :  { %1016 = vsyncadd [#allocation6], 4294948864 }
  0x4c   :  { %1017 = dma.done.wait [#allocation9], 4096  }
  0x4d   :  { %1018 = vsyncadd [#allocation9], 4294963200  ;;  %v1029_v1 = vmov 0.0   ;;  %v83_v2 = vld [vmem:[#allocation5 + $0x8] sm:$0xff]  ;;  %v82_v4 = vld [vmem:[#allocation5] sm:$0xff]  ;;  %vm120_vm0 = vcmask 261120  }
  0x4e   :  { %188 = vmatprep.mubr.f32.mxu0 %v1029_v1  ;;  %v87_v3 = vld [vmem:[#allocation5 + $0x28] sm:$0xff]  ;;  %v86_v6 = vld [vmem:[#allocation5 + $0x20] sm:$0xff]  ;;  %v85_v13 = vld [vmem:[#allocation5 + $0x18] sm:$0xff]  ;;  %vm682_vm7 = vcmask 7168  }
  0x4f   :  { %v730_v5 = vpack.c.bf16 %v87_v3, %v83_v2  ;;  %v91_v7 = vld [vmem:[#allocation5 + $0x48] sm:$0xff]  ;;  %v732_v9 = vpack.c.bf16 %v86_v6, %v82_v4  ;;  %v90_v11 = vld [vmem:[#allocation5 + $0x40] sm:$0xff]  ;;  %v89_v14 = vld [vmem:[#allocation5 + $0x38] sm:$0xff] }
  0x50   :  { %v95_v8 = vld [vmem:[#allocation5 + $0x68] sm:$0xff]  ;;  %v94_v12 = vld [vmem:[#allocation5 + $0x60] sm:$0xff]  ;;  %v84_v16 = vld [vmem:[#allocation5 + $0x10] sm:$0xff]  ;;  %v738_v18 = vpack.c.bf16 %v89_v14, %v85_v13 }
  0x51   :  { %v734_v10 = vpack.c.bf16 %v95_v8, %v91_v7  ;;  %731 = vmatprep.subr.bf16.mxu0 %v730_v5  ;;  %v736_v15 = vpack.c.bf16 %v94_v12, %v90_v11  ;;  %v88_v17 = vld [vmem:[#allocation5 + $0x30] sm:$0xff]  ;;  %v93_v19 = vld [vmem:[#allocation5 + $0x58] sm:$0xff]  ;;  %v279_v21 = vld [vmem:[#allocation7 + $0x8] sm:$0xff] }
  0x52   :  { %733 = vmatpush1.bf16.msra.mxu0 %v732_v9  ;;  %v97_v20 = vld [vmem:[#allocation5 + $0x78] sm:$0xff]  ;;  %v278_v24 = vld [vmem:[#allocation7] sm:$0xff]  ;;  %v280_v25 = vld [vmem:[#allocation7 + $0x10] sm:$0xff]  ;;  %v740_v31 = vpack.c.bf16 %v88_v17, %v84_v16 }
  0x53   :  { %735 = vmatprep.subr.bf16.mxu0 %v734_v10  ;;  %v81_v22 = vld [vmem:[#allocation3] sm:$0xff]  ;;  %v748_v27 = vpack.c.bf16 %v280_v25, %v278_v24  ;;  %v283_v28 = vld [vmem:[#allocation7 + $0x28] sm:$0xff]  ;;  %v282_v30 = vld [vmem:[#allocation7 + $0x20] sm:$0xff]  ;;  %v742_v36 = vpack.c.bf16 %v97_v20, %v93_v19 }
  0x54   :  { %v281_v23 = vld [vmem:[#allocation7 + $0x18] sm:$0xff]  ;;  %v284_v33 = vld [vmem:[#allocation7 + $0x30] sm:$0xff]  ;;  %v287_v34 = vld [vmem:[#allocation7 + $0x48] sm:$0xff] }
  0x55   :  { %v746_v26 = vpack.c.bf16 %v281_v23, %v279_v21  ;;  %v285_v29 = vld [vmem:[#allocation7 + $0x38] sm:$0xff]  ;;  %v92_v37 = vld [vmem:[#allocation5 + $0x50] sm:$0xff]  ;;  %v752_v39 = vpack.c.bf16 %v284_v33, %v282_v30  ;;  %v343_v40 = vld [vmem:[#allocation7 + $0x208] sm:$0xff] }
  0x56   :  { %737 = vmatpush1.bf16.msra.mxu0 %v736_v15  ;;  %v750_v32 = vpack.c.bf16 %v285_v29, %v283_v28  ;;  %v289_v35 = vld [vmem:[#allocation7 + $0x58] sm:$0xff]  ;;  %v96_v38 = vld [vmem:[#allocation5 + $0x70] sm:$0xff]  ;;  %v286_v43 = vld [vmem:[#allocation7 + $0x40] sm:$0xff] }
  0x57   :  { %739 = vmatprep.subr.bf16.mxu0 %v738_v18  ;;  %747 = vmatprep.subr.bf16.mxu1 %v746_v26  ;;  %v345_v41 = vld [vmem:[#allocation7 + $0x218] sm:$0xff]  ;;  %v754_v42 = vpack.c.bf16 %v289_v35, %v287_v34  ;;  %v288_v44 = vld [vmem:[#allocation7 + $0x50] sm:$0xff]  ;;  %v744_v45 = vpack.c.bf16 %v96_v38, %v92_v37  ;;  %v291_v46 = vld [vmem:[#allocation7 + $0x68] sm:$0xff] }
  0x58   :  { %749 = vmatpush1.bf16.msra.mxu1 %v748_v27  ;;  %v293_v47 = vld [vmem:[#allocation7 + $0x78] sm:$0xff]  ;;  %v810_v48 = vpack.c.bf16 %v345_v41, %v343_v40  ;;  %v342_v49 = vld [vmem:[#allocation7 + $0x200] sm:$0xff]  ;;  %v344_v50 = vld [vmem:[#allocation7 + $0x210] sm:$0xff]  ;;  %v756_v51 = vpack.c.bf16 %v288_v44, %v286_v43 }
  0x59   :  { %691 = vmatmul.mubr.msk.f32.vlgmr.msra.gmra.mrb[0].mxu0 %vm120_vm0, %v81_v22  ;;  %751 = vmatprep.subr.bf16.mxu1 %v750_v32  ;;  %v347_v52 = vld [vmem:[#allocation7 + $0x228] sm:$0xff]  ;;  %v349_v53 = vld [vmem:[#allocation7 + $0x238] sm:$0xff]  ;;  %v758_v54 = vpack.c.bf16 %v293_v47, %v291_v46  ;;  %v290_v55 = vld [vmem:[#allocation7 + $0x60] sm:$0xff]  ;;  %v812_v57 = vpack.c.bf16 %v344_v50, %v342_v49 }
  0x5a   :  { %741 = vmatpush1.bf16.msra.mxu0 %v740_v31  ;;  %259 = vmatprep.mubr.f32.mxu0 %v1029_v1  ;;  %v292_v56 = vld [vmem:[#allocation7 + $0x70] sm:$0xff]  ;;  %v295_v58 = vld [vmem:[#allocation7 + $0x88] sm:$0xff]  ;;  %v297_v59 = vld [vmem:[#allocation7 + $0x98] sm:$0xff]  ;;  %v814_v60 = vpack.c.bf16 %v349_v53, %v347_v52 }
  0x5b   :  { %743 = vmatprep.subr.bf16.mxu0 %v742_v36  ;;  %v346_v61 = vld [vmem:[#allocation7 + $0x220] sm:$0xff]  ;;  %v348_v62 = vld [vmem:[#allocation7 + $0x230] sm:$0xff]  ;;  %v760_v63 = vpack.c.bf16 %v292_v56, %v290_v55  ;;  %v351_v0 = vld [vmem:[#allocation7 + $0x248] sm:$0xff]  ;;  %v762_v2 = vpack.c.bf16 %v297_v59, %v295_v58 }
  0x5c   :  { %753 = vmatpush1.bf16.msra.mxu1 %v752_v39  ;;  %v353_v1 = vld [vmem:[#allocation7 + $0x258] sm:$0xff]  ;;  %v294_v3 = vld [vmem:[#allocation7 + $0x80] sm:$0xff]  ;;  %v296_v4 = vld [vmem:[#allocation7 + $0x90] sm:$0xff]  ;;  %v816_v5 = vpack.c.bf16 %v348_v62, %v346_v61 }
  0x5d   :  { %755 = vmatprep.subr.bf16.mxu1 %v754_v42  ;;  %v299_v6 = vld [vmem:[#allocation7 + $0xa8] sm:$0xff]  ;;  %v301_v7 = vld [vmem:[#allocation7 + $0xb8] sm:$0xff]  ;;  %v818_v8 = vpack.c.bf16 %v353_v1, %v351_v0  ;;  %v350_v9 = vld [vmem:[#allocation7 + $0x240] sm:$0xff]  ;;  %v764_v11 = vpack.c.bf16 %v296_v4, %v294_v3 }
  0x5e   :  { %745 = vmatpush1.bf16.msra.mxu0 %v744_v45  ;;  %v352_v10 = vld [vmem:[#allocation7 + $0x250] sm:$0xff]  ;;  %v355_v12 = vld [vmem:[#allocation7 + $0x268] sm:$0xff]  ;;  %v357_v13 = vld [vmem:[#allocation7 + $0x278] sm:$0xff]  ;;  %v766_v14 = vpack.c.bf16 %v301_v7, %v299_v6 }
  0x5f   :  { %811 = vmatprep.subr.bf16.mxu0 %v810_v48  ;;  %v298_v15 = vld [vmem:[#allocation7 + $0xa0] sm:$0xff]  ;;  %v300_v16 = vld [vmem:[#allocation7 + $0xb0] sm:$0xff]  ;;  %v820_v17 = vpack.c.bf16 %v352_v10, %v350_v9  ;;  %v303_v18 = vld [vmem:[#allocation7 + $0xc8] sm:$0xff]  ;;  %v822_v20 = vpack.c.bf16 %v357_v13, %v355_v12 }
  0x60   :  { %757 = vmatpush1.bf16.msra.mxu1 %v756_v51  ;;  %v305_v19 = vld [vmem:[#allocation7 + $0xd8] sm:$0xff]  ;;  %v354_v21 = vld [vmem:[#allocation7 + $0x260] sm:$0xff]  ;;  %v768_v23 = vpack.c.bf16 %v300_v16, %v298_v15  ;;  %v359_v24 = vld [vmem:[#allocation7 + $0x288] sm:$0xff] }
  0x61   :  { %692 = vmatmul.mubr.msk.f32.vlgmr.msra.gmra.mrb[2].mxu0 %vm120_vm0, %v81_v22  ;;  %759 = vmatprep.subr.bf16.mxu1 %v758_v54  ;;  %v356_v22 = vld [vmem:[#allocation7 + $0x270] sm:$0xff]  ;;  %v361_v25 = vld [vmem:[#allocation7 + $0x298] sm:$0xff]  ;;  %v770_v26 = vpack.c.bf16 %v305_v19, %v303_v18  ;;  %v302_v27 = vld [vmem:[#allocation7 + $0xc0] sm:$0xff] }
  0x62   :  { %813 = vmatpush1.bf16.msra.mxu0 %v812_v57  ;;  %v304_v28 = vld [vmem:[#allocation7 + $0xd0] sm:$0xff]  ;;  %v824_v29 = vpack.c.bf16 %v356_v22, %v354_v21  ;;  %v307_v30 = vld [vmem:[#allocation7 + $0xe8] sm:$0xff]  ;;  %v309_v31 = vld [vmem:[#allocation7 + $0xf8] sm:$0xff]  ;;  %v826_v32 = vpack.c.bf16 %v361_v25, %v359_v24 }
  0x63   :  { %815 = vmatprep.subr.bf16.mxu0 %v814_v60  ;;  %v358_v33 = vld [vmem:[#allocation7 + $0x280] sm:$0xff]  ;;  %v360_v34 = vld [vmem:[#allocation7 + $0x290] sm:$0xff]  ;;  %v772_v35 = vpack.c.bf16 %v304_v28, %v302_v27  ;;  %v363_v36 = vld [vmem:[#allocation7 + $0x2a8] sm:$0xff]  ;;  %v774_v38 = vpack.c.bf16 %v309_v31, %v307_v30 }
  0x64   :  { %761 = vmatpush1.bf16.msra.mxu1 %v760_v63  ;;  %v365_v37 = vld [vmem:[#allocation7 + $0x2b8] sm:$0xff]  ;;  %v306_v39 = vld [vmem:[#allocation7 + $0xe0] sm:$0xff]  ;;  %v308_v40 = vld [vmem:[#allocation7 + $0xf0] sm:$0xff]  ;;  %v828_v41 = vpack.c.bf16 %v360_v34, %v358_v33 }
  0x65   :  { %763 = vmatprep.subr.bf16.mxu1 %v762_v2  ;;  %v311_v42 = vld [vmem:[#allocation7 + $0x108] sm:$0xff]  ;;  %v313_v43 = vld [vmem:[#allocation7 + $0x118] sm:$0xff]  ;;  %v830_v44 = vpack.c.bf16 %v365_v37, %v363_v36  ;;  %v362_v45 = vld [vmem:[#allocation7 + $0x2a0] sm:$0xff]  ;;  %v776_v47 = vpack.c.bf16 %v308_v40, %v306_v39 }
  0x66   :  { %817 = vmatpush1.bf16.msra.mxu0 %v816_v5  ;;  %v364_v46 = vld [vmem:[#allocation7 + $0x2b0] sm:$0xff]  ;;  %v367_v48 = vld [vmem:[#allocation7 + $0x2c8] sm:$0xff]  ;;  %v369_v49 = vld [vmem:[#allocation7 + $0x2d8] sm:$0xff]  ;;  %v778_v50 = vpack.c.bf16 %v313_v43, %v311_v42 }
  0x67   :  { %819 = vmatprep.subr.bf16.mxu0 %v818_v8  ;;  %v310_v51 = vld [vmem:[#allocation7 + $0x100] sm:$0xff]  ;;  %v312_v52 = vld [vmem:[#allocation7 + $0x110] sm:$0xff]  ;;  %v832_v53 = vpack.c.bf16 %v364_v46, %v362_v45  ;;  %v315_v54 = vld [vmem:[#allocation7 + $0x128] sm:$0xff]  ;;  %v834_v56 = vpack.c.bf16 %v369_v49, %v367_v48 }
  0x68   :  { %765 = vmatpush1.bf16.msra.mxu1 %v764_v11  ;;  %v317_v55 = vld [vmem:[#allocation7 + $0x138] sm:$0xff]  ;;  %v366_v57 = vld [vmem:[#allocation7 + $0x2c0] sm:$0xff]  ;;  %v368_v58 = vld [vmem:[#allocation7 + $0x2d0] sm:$0xff]  ;;  %v780_v59 = vpack.c.bf16 %v312_v52, %v310_v51 }
  0x69   :  { %767 = vmatprep.subr.bf16.mxu1 %v766_v14  ;;  %v371_v60 = vld [vmem:[#allocation7 + $0x2e8] sm:$0xff]  ;;  %v373_v61 = vld [vmem:[#allocation7 + $0x2f8] sm:$0xff]  ;;  %v782_v62 = vpack.c.bf16 %v317_v55, %v315_v54  ;;  %v314_v63 = vld [vmem:[#allocation7 + $0x120] sm:$0xff]  ;;  %v836_v1 = vpack.c.bf16 %v368_v58, %v366_v57 }
  0x6a   :  { %821 = vmatpush1.bf16.msra.mxu0 %v820_v17  ;;  %v316_v0 = vld [vmem:[#allocation7 + $0x130] sm:$0xff]  ;;  %v319_v2 = vld [vmem:[#allocation7 + $0x148] sm:$0xff]  ;;  %v321_v3 = vld [vmem:[#allocation7 + $0x158] sm:$0xff]  ;;  %v838_v4 = vpack.c.bf16 %v373_v61, %v371_v60 }
  0x6b   :  { %823 = vmatprep.subr.bf16.mxu0 %v822_v20  ;;  %v370_v5 = vld [vmem:[#allocation7 + $0x2e0] sm:$0xff]  ;;  %v372_v6 = vld [vmem:[#allocation7 + $0x2f0] sm:$0xff]  ;;  %v784_v7 = vpack.c.bf16 %v316_v0, %v314_v63  ;;  %v375_v8 = vld [vmem:[#allocation7 + $0x308] sm:$0xff]  ;;  %v786_v10 = vpack.c.bf16 %v321_v3, %v319_v2 }
  0x6c   :  { %769 = vmatpush1.bf16.msra.mxu1 %v768_v23  ;;  %v377_v9 = vld [vmem:[#allocation7 + $0x318] sm:$0xff]  ;;  %v318_v11 = vld [vmem:[#allocation7 + $0x140] sm:$0xff]  ;;  %v320_v12 = vld [vmem:[#allocation7 + $0x150] sm:$0xff]  ;;  %v840_v13 = vpack.c.bf16 %v372_v6, %v370_v5 }
  0x6d   :  { %771 = vmatprep.subr.bf16.mxu1 %v770_v26  ;;  %v323_v14 = vld [vmem:[#allocation7 + $0x168] sm:$0xff]  ;;  %v325_v15 = vld [vmem:[#allocation7 + $0x178] sm:$0xff]  ;;  %v842_v16 = vpack.c.bf16 %v377_v9, %v375_v8  ;;  %v374_v17 = vld [vmem:[#allocation7 + $0x300] sm:$0xff]  ;;  %v788_v19 = vpack.c.bf16 %v320_v12, %v318_v11 }
  0x6e   :  { %825 = vmatpush1.bf16.msra.mxu0 %v824_v29  ;;  %v376_v18 = vld [vmem:[#allocation7 + $0x310] sm:$0xff]  ;;  %v379_v20 = vld [vmem:[#allocation7 + $0x328] sm:$0xff]  ;;  %v381_v21 = vld [vmem:[#allocation7 + $0x338] sm:$0xff]  ;;  %v790_v22 = vpack.c.bf16 %v325_v15, %v323_v14 }
  0x6f   :  { %827 = vmatprep.subr.bf16.mxu0 %v826_v32  ;;  %v322_v23 = vld [vmem:[#allocation7 + $0x160] sm:$0xff]  ;;  %v324_v24 = vld [vmem:[#allocation7 + $0x170] sm:$0xff]  ;;  %v844_v25 = vpack.c.bf16 %v376_v18, %v374_v17  ;;  %v327_v26 = vld [vmem:[#allocation7 + $0x188] sm:$0xff]  ;;  %v846_v28 = vpack.c.bf16 %v381_v21, %v379_v20 }
  0x70   :  { %773 = vmatpush1.bf16.msra.mxu1 %v772_v35  ;;  %v329_v27 = vld [vmem:[#allocation7 + $0x198] sm:$0xff]  ;;  %v378_v29 = vld [vmem:[#allocation7 + $0x320] sm:$0xff]  ;;  %v380_v30 = vld [vmem:[#allocation7 + $0x330] sm:$0xff]  ;;  %v792_v31 = vpack.c.bf16 %v324_v24, %v322_v23 }
  0x71   :  { %775 = vmatprep.subr.bf16.mxu1 %v774_v38  ;;  %v383_v32 = vld [vmem:[#allocation7 + $0x348] sm:$0xff]  ;;  %v385_v33 = vld [vmem:[#allocation7 + $0x358] sm:$0xff]  ;;  %v794_v34 = vpack.c.bf16 %v329_v27, %v327_v26  ;;  %v326_v35 = vld [vmem:[#allocation7 + $0x180] sm:$0xff]  ;;  %v848_v37 = vpack.c.bf16 %v380_v30, %v378_v29  ;;  %v100_v30 = vlaneseq }
  0x72   :  { %829 = vmatpush1.bf16.msra.mxu0 %v828_v41  ;;  %v328_v36 = vld [vmem:[#allocation7 + $0x190] sm:$0xff]  ;;  %v331_v38 = vld [vmem:[#allocation7 + $0x1a8] sm:$0xff]  ;;  %v333_v39 = vld [vmem:[#allocation7 + $0x1b8] sm:$0xff]  ;;  %v850_v40 = vpack.c.bf16 %v385_v33, %v383_v32 }
  0x73   :  { %831 = vmatprep.subr.bf16.mxu0 %v830_v44  ;;  %v382_v41 = vld [vmem:[#allocation7 + $0x340] sm:$0xff]  ;;  %v384_v42 = vld [vmem:[#allocation7 + $0x350] sm:$0xff]  ;;  %v796_v43 = vpack.c.bf16 %v328_v36, %v326_v35  ;;  %v387_v44 = vld [vmem:[#allocation7 + $0x368] sm:$0xff]  ;;  %v798_v46 = vpack.c.bf16 %v333_v39, %v331_v38 }
  0x74   :  { %777 = vmatpush1.bf16.msra.mxu1 %v776_v47  ;;  %v389_v45 = vld [vmem:[#allocation7 + $0x378] sm:$0xff]  ;;  %v330_v47 = vld [vmem:[#allocation7 + $0x1a0] sm:$0xff]  ;;  %v332_v48 = vld [vmem:[#allocation7 + $0x1b0] sm:$0xff]  ;;  %v852_v49 = vpack.c.bf16 %v384_v42, %v382_v41 }
  0x75   :  { %779 = vmatprep.subr.bf16.mxu1 %v778_v50  ;;  %v854_v50 = vpack.c.bf16 %v389_v45, %v387_v44  ;;  %v386_v51 = vld [vmem:[#allocation7 + $0x360] sm:$0xff]  ;;  %v388_v52 = vld [vmem:[#allocation7 + $0x370] sm:$0xff]  ;;  %v335_v55 = vld [vmem:[#allocation7 + $0x1c8] sm:$0xff] }
  0x76   :  { %833 = vmatpush1.bf16.msra.mxu0 %v832_v53  ;;  %v800_v53 = vpack.c.bf16 %v332_v48, %v330_v47  ;;  %v856_v54 = vpack.c.bf16 %v388_v52, %v386_v51  ;;  %v391_v57 = vld [vmem:[#allocation7 + $0x388] sm:$0xff]  ;;  %v334_v60 = vld [vmem:[#allocation7 + $0x1c0] sm:$0xff]  ;;  %v336_v61 = vld [vmem:[#allocation7 + $0x1d0] sm:$0xff] }
  0x77   :  { %835 = vmatprep.subr.bf16.mxu0 %v834_v56  ;;  %v337_v56 = vld [vmem:[#allocation7 + $0x1d8] sm:$0xff]  ;;  %v804_v63 = vpack.c.bf16 %v336_v61, %v334_v60  ;;  %v390_v0 = vld [vmem:[#allocation7 + $0x380] sm:$0xff]  ;;  %v339_v3 = vld [vmem:[#allocation7 + $0x1e8] sm:$0xff] }
  0x78   :  { %781 = vmatpush1.bf16.msra.mxu1 %v780_v59  ;;  %v802_v58 = vpack.c.bf16 %v337_v56, %v335_v55  ;;  %v393_v59 = vld [vmem:[#allocation7 + $0x398] sm:$0xff]  ;;  %v395_v5 = vld [vmem:[#allocation7 + $0x3a8] sm:$0xff]  ;;  %v338_v8 = vld [vmem:[#allocation7 + $0x1e0] sm:$0xff] }
  0x79   :  { %783 = vmatprep.subr.bf16.mxu1 %v782_v62  ;;  %v858_v62 = vpack.c.bf16 %v393_v59, %v391_v57  ;;  %v340_v9 = vld [vmem:[#allocation7 + $0x1f0] sm:$0xff]  ;;  %v394_v12 = vld [vmem:[#allocation7 + $0x3a0] sm:$0xff]  ;;  %v399_v15 = vld [vmem:[#allocation7 + $0x3c8] sm:$0xff] }
  0x7a   :  { %837 = vmatpush1.bf16.msra.mxu0 %v836_v1  ;;  %v392_v1 = vld [vmem:[#allocation7 + $0x390] sm:$0xff]  ;;  %v808_v11 = vpack.c.bf16 %v340_v9, %v338_v8  ;;  %v398_v18 = vld [vmem:[#allocation7 + $0x3c0] sm:$0xff]  ;;  %v403_v21 = vld [vmem:[#allocation7 + $0x3e8] sm:$0xff] }
  0x7b   :  { %839 = vmatprep.subr.bf16.mxu0 %v838_v4  ;;  %v860_v2 = vpack.c.bf16 %v392_v1, %v390_v0  ;;  %v341_v4 = vld [vmem:[#allocation7 + $0x1f8] sm:$0xff]  ;;  %v402_v24 = vld [vmem:[#allocation7 + $0x3e0] sm:$0xff]  ;;  %v567_v44 = vld [vmem:[#allocation8 + $0x8] sm:$0xff] }
  0x7c   :  { %785 = vmatpush1.bf16.msra.mxu1 %v784_v7  ;;  %v806_v6 = vpack.c.bf16 %v341_v4, %v339_v3  ;;  %v397_v7 = vld [vmem:[#allocation7 + $0x3b8] sm:$0xff]  ;;  %v582_v27 = vld [vmem:[#allocation8 + $0x80] sm:$0xff]  ;;  %v588_v4 = vld [vmem:[#allocation8 + $0xb0] sm:$0xff] }
  0x7d   :  { %787 = vmatprep.subr.bf16.mxu1 %v786_v10  ;;  %v862_v10 = vpack.c.bf16 %v397_v7, %v395_v5  ;;  %v98_v33 = vld [vmem:[%s1148_s2] sm:$0xf]  ;;  %v586_v57 = vld [vmem:[#allocation8 + $0xa0] sm:$0xff] }
  0x7e   :  { %841 = vmatpush1.bf16.msra.mxu0 %v840_v13  ;;  %v396_v13 = vld [vmem:[#allocation7 + $0x3b0] sm:$0xff]  ;;  %v585_v47 = vld [vmem:[#allocation8 + $0x98] sm:$0xff]  ;;  %v570_v1 = vld [vmem:[#allocation8 + $0x20] sm:$0xff] }
  0x7f   :  { %843 = vmatprep.subr.bf16.mxu0 %v842_v16  ;;  %v864_v14 = vpack.c.bf16 %v396_v13, %v394_v12  ;;  %v401_v16 = vld [vmem:[#allocation7 + $0x3d8] sm:$0xff] }
  0x80   :  { %789 = vmatpush1.bf16.msra.mxu1 %v788_v19  ;;  %v866_v17 = vpack.c.bf16 %v401_v16, %v399_v15  ;;  %v400_v19 = vld [vmem:[#allocation7 + $0x3d0] sm:$0xff]  ;;  %v569_v55 = vld [vmem:[#allocation8 + $0x18] sm:$0xff]  ;;  %v591_v15 = vld [vmem:[#allocation8 + $0xc8] sm:$0xff] }
  0x81   :  { %791 = vmatprep.subr.bf16.mxu1 %v790_v22  ;;  %v868_v20 = vpack.c.bf16 %v400_v19, %v398_v18  ;;  %v405_v22 = vld [vmem:[#allocation7 + $0x3f8] sm:$0xff]  ;;  %v575_v18 = vld [vmem:[#allocation8 + $0x48] sm:$0xff] }
  0x82   :  { %845 = vmatpush1.bf16.msra.mxu0 %v844_v25  ;;  %v870_v23 = vpack.c.bf16 %v405_v22, %v403_v21  ;;  %v404_v25 = vld [vmem:[#allocation7 + $0x3f0] sm:$0xff]  ;;  %v589_v5 = vld [vmem:[#allocation8 + $0xb8] sm:$0xff] }
  0x83   :  { %847 = vmatprep.subr.bf16.mxu0 %v846_v28  ;;  %v872_v26 = vpack.c.bf16 %v404_v25, %v402_v24  ;;  %v583_v28 = vld [vmem:[#allocation8 + $0x88] sm:$0xff]  ;;  %v886_v9 = vpack.c.bf16 %v589_v5, %v588_v4  ;;  %v593_v21 = vld [vmem:[#allocation8 + $0xd8] sm:$0xff] }
  0x84   :  { %793 = vmatpush1.bf16.msra.mxu1 %v792_v31  ;;  %v874_v29 = vpack.c.bf16 %v583_v28, %v582_v27  ;;  %v1123_v31 = vshrl.u32 %v100_v30, 7  ;;  %v577_v24 = vld [vmem:[#allocation8 + $0x58] sm:$0xff]  ;;  %v595_v27 = vld [vmem:[#allocation8 + $0xe8] sm:$0xff] }
  0x85   :  { %795 = vmatprep.subr.bf16.mxu1 %v794_v34  ;;  %v579_v30 = vld [vmem:[#allocation8 + $0x68] sm:$0xff] }
  0x86   :  { %849 = vmatpush1.bf16.msra.mxu0 %v848_v37  ;;  %v102_v32 = vsub.s32 0, %v1123_v31  ;;  %v106_v34 = vsub.s32 1, %v1123_v31  ;;  %v114_v42 = vsub.s32 3, %v1123_v31 }
  0x87   :  { %851 = vmatprep.subr.bf16.mxu0 %v850_v40  ;;  %v110_v40 = vsub.s32 2, %v1123_v31 }
  0x88   :  { %797 = vmatpush1.bf16.msra.mxu1 %v796_v43  ;;  %v103_v35 = vrot.slane %v98_v33, %v102_v32  ;;  %v107_v36 = vrot.slane %v98_v33, %v106_v34  ;;  %v566_v43 = vld [vmem:[#allocation8] sm:$0xff]  ;;  %v115_v52 = vrot.slane %v98_v33, %v114_v42 }
  0x89   :  { %799 = vmatprep.subr.bf16.mxu1 %v798_v46  ;;  %v584_v46 = vld [vmem:[#allocation8 + $0x90] sm:$0xff] }
  0x8a   :  { %853 = vmatpush1.bf16.msra.mxu0 %v852_v49  ;;  %v111_v49 = vrot.slane %v98_v33, %v110_v40 }
  0x8b   :  { %855 = vmatprep.subr.bf16.mxu0 %v854_v50  ;;  %v876_v50 = vpack.c.bf16 %v567_v44, %v566_v43 }
  0x8c   :  { %801 = vmatpush1.bf16.msra.mxu1 %v800_v53  ;;  %v878_v53 = vpack.c.bf16 %v585_v47, %v584_v46 }
  0x8d   :  { %803 = vmatprep.subr.bf16.mxu1 %v802_v58  ;;  %v587_v58 = vld [vmem:[#allocation8 + $0xa8] sm:$0xff] }
  0x8e   :  { %857 = vmatpush1.bf16.msra.mxu0 %v856_v54  ;;  %v568_v54 = vld [vmem:[#allocation8 + $0x10] sm:$0xff]  ;;  %v882_v0 = vpack.c.bf16 %v587_v58, %v586_v57 }
  0x8f   :  { %859 = vmatprep.subr.bf16.mxu0 %v858_v62  ;;  %v880_v62 = vpack.c.bf16 %v569_v55, %v568_v54 }
  0x90   :  { %805 = vmatpush1.bf16.msra.mxu1 %v804_v63 }
  0x91   :  { %807 = vmatprep.subr.bf16.mxu1 %v806_v6 }
  0x92   :  { %861 = vmatpush1.bf16.msra.mxu0 %v860_v2  ;;  %v571_v2 = vld [vmem:[#allocation8 + $0x28] sm:$0xff] }
  0x93   :  { %863 = vmatprep.subr.bf16.mxu0 %v862_v10  ;;  %v884_v7 = vpack.c.bf16 %v571_v2, %v570_v1  ;;  %v572_v10 = vld [vmem:[#allocation8 + $0x30] sm:$0xff] }
  0x94   :  { %809 = vmatpush1.bf16.msra.mxu1 %v808_v11  ;;  %v573_v11 = vld [vmem:[#allocation8 + $0x38] sm:$0xff] }
  0x95   :  { %875 = vmatprep.subr.bf16.mxu1 %v874_v29  ;;  %v888_v13 = vpack.c.bf16 %v573_v11, %v572_v10  ;;  %v578_v29 = vld [vmem:[#allocation8 + $0x60] sm:$0xff] }
  0x96   :  { %865 = vmatpush1.bf16.msra.mxu0 %v864_v14  ;;  %v590_v14 = vld [vmem:[#allocation8 + $0xc0] sm:$0xff]  ;;  %v900_v33 = vpack.c.bf16 %v579_v30, %v578_v29 }
  0x97   :  { %867 = vmatprep.subr.bf16.mxu0 %v866_v17  ;;  %v890_v16 = vpack.c.bf16 %v591_v15, %v590_v14  ;;  %v574_v17 = vld [vmem:[#allocation8 + $0x40] sm:$0xff] }
  0x98   :  { %v892_v19 = vpack.c.bf16 %v575_v18, %v574_v17 }
  0x9a   :  { %869 = vmatpush1.bf16.msra.mxu0 %v868_v20  ;;  %v592_v20 = vld [vmem:[#allocation8 + $0xd0] sm:$0xff] }
  0x9b   :  { %871 = vmatprep.subr.bf16.mxu0 %v870_v23  ;;  %v894_v22 = vpack.c.bf16 %v593_v21, %v592_v20  ;;  %v576_v23 = vld [vmem:[#allocation8 + $0x50] sm:$0xff] }
  0x9c   :  { %v896_v25 = vpack.c.bf16 %v577_v24, %v576_v23 }
  0x9e   :  { %873 = vmatpush1.bf16.msra.mxu0 %v872_v26  ;;  %v594_v26 = vld [vmem:[#allocation8 + $0xe0] sm:$0xff] }
  0x9f   :  { %v898_v28 = vpack.c.bf16 %v595_v27, %v594_v26 }
 0x12c   :  { %v190_v37 = vpop.f32.mrb[0].mxu0 }
 0x12d   :  { %v191_v38 = vadd.f32 %v190_v37, %v103_v35  ;;  %v192_v39 = vpop.f32.mrb[1].mxu0  ;;  %v596_v35 = vld [vmem:[#allocation8 + $0xf0] sm:$0xff] }
 0x12e   :  { %v193_v41 = vadd.f32 %v192_v39, %v107_v36  ;;  %v597_v36 = vld [vmem:[#allocation8 + $0xf8] sm:$0xff] }
 0x12f   :  { %v270_v45 = vmul.f32 0.2, %v191_v38  ;;  %vm266_vm2 = vcmp.gt.f32.partialorder %v191_v38, 0.0  ;;  %v902_v37 = vpack.c.bf16 %v597_v36, %v596_v35  ;;  %v581_v39 = vld [vmem:[#allocation8 + $0x78] sm:$0xff] }
 0x130   :  { %vm267_vm1 = vcmp.gt.f32.partialorder %v193_v41, 0.0  ;;  %v271_v48 = vmul.f32 0.2, %v193_v41 }
 0x131   :  { %v274_v56 = vsel %vm266_vm2, %v191_v38, %v270_v45  ;;  %v580_v38 = vld [vmem:[#allocation8 + $0x70] sm:$0xff] }
 0x132   :  { %v275_v51 = vsel %vm267_vm1, %v193_v41, %v271_v48  ;;  %v904_v40 = vpack.c.bf16 %v581_v39, %v580_v38  ;;  %v406_v41 = vld [vmem:[%s1150_s4] sm:$0x3] }
 0x133   :  { %482 = vmatprep.mubr.f32.mxu1 %v275_v51  ;;  %v411_v44 = vrot.slane %v406_v41, %v102_v32  ;;  %v415_v45 = vrot.slane %v406_v41, %v106_v34  ;;  %v693_v32 = vld [vmem:[#allocation2] ss:$0 sm:$0xff] }
 0x134   :  { %v261_v59 = vpop.f32.mrb[2].mxu0  ;;  %483 = vmatmul.mubr.f32.vlgmr.msra.gmra.mrb[0].mxu1 %v274_v56 }
 0x135   :  { %v262_v60 = vadd.f32 %v261_v59, %v111_v49  ;;  %v263_v61 = vpop.f32.mrb[3].mxu0  ;;  %877 = vmatpush3.bf16.msra.mxu1 %v876_v50 }
 0x136   :  { %v264_v63 = vadd.f32 %v263_v61, %v115_v52  ;;  %879 = vmatprep.subr.bf16.mxu1 %v878_v53 }
 0x137   :  { %v272_v3 = vmul.f32 0.2, %v262_v60  ;;  %vm268_vm3 = vcmp.gt.f32.partialorder %v262_v60, 0.0 }
 0x138   :  { %v273_v6 = vmul.f32 0.2, %v264_v63  ;;  %vm269_vm4 = vcmp.gt.f32.partialorder %v264_v63, 0.0 }
 0x139   :  { %881 = vmatpush3.bf16.msra.mxu1 %v880_v62  ;;  %v276_v12 = vsel %vm268_vm3, %v262_v60, %v272_v3 }
 0x13a   :  { %v277_v8 = vsel %vm269_vm4, %v264_v63, %v273_v6  ;;  %883 = vmatprep.subr.bf16.mxu1 %v882_v0 }
 0x13b   :  { %553 = vmatprep.mubr.f32.mxu0 %v277_v8 }
 0x13c   :  { %554 = vmatmul.mubr.f32.vlgmr.msra.gmra.mrb[4].mxu0 %v276_v12 }
 0x13d   :  { %885 = vmatpush3.bf16.msra.mxu1 %v884_v7 }
 0x13e   :  { %887 = vmatprep.subr.bf16.mxu1 %v886_v9 }
 0x141   :  { %889 = vmatpush3.bf16.msra.mxu1 %v888_v13 }
 0x142   :  { %891 = vmatprep.subr.bf16.mxu1 %v890_v16 }
 0x145   :  { %893 = vmatpush3.bf16.msra.mxu1 %v892_v19 }
 0x146   :  { %895 = vmatprep.subr.bf16.mxu1 %v894_v22 }
 0x149   :  { %897 = vmatpush3.bf16.msra.mxu1 %v896_v25 }
 0x14a   :  { %899 = vmatprep.subr.bf16.mxu1 %v898_v28 }
 0x14d   :  { %901 = vmatpush3.bf16.msra.mxu1 %v900_v33 }
 0x14e   :  { %903 = vmatprep.subr.bf16.mxu1 %v902_v37 }
 0x151   :  { %905 = vmatpush3.bf16.msra.mxu1 %v904_v40 }
 0x207   :  { %v484_v42 = vpop.f32.mrb[0].mxu1 }
 0x208   :  { %v486_v43 = vpop.f32.mrb[1].mxu1  ;;  %v485_v46 = vadd.f32 %v484_v42, %v411_v44 }
 0x209   :  { %v487_v47 = vadd.f32 %v486_v43, %v415_v45 }
 0x20f   :  { %v555_v48 = vpop.f32.mrb[4].mxu0 }
 0x210   :  { %v556_v49 = vadd.f32 %v555_v48, %v485_v46  ;;  %v557_v50 = vpop.f32.mrb[5].mxu0 }
 0x211   :  { %v558_v51 = vadd.f32 %v557_v50, %v487_v47 }
 0x212   :  { %v562_v52 = vmul.f32 0.2, %v556_v49  ;;  %vm560_vm5 = vcmp.gt.f32.partialorder %v556_v49, 0.0 }
 0x213   :  { %v563_v53 = vmul.f32 0.2, %v558_v51  ;;  %vm561_vm6 = vcmp.gt.f32.partialorder %v558_v51, 0.0 }
 0x214   :  { %v564_v55 = vsel %vm560_vm5, %v556_v49, %v562_v52 }
 0x215   :  { %v565_v54 = vsel %vm561_vm6, %v558_v51, %v563_v53 }
 0x216   :  { %662 = vmatprep.mubr.f32.mxu1 %v565_v54 }
 0x217   :  { %663 = vmatmul.mubr.f32.vlgmr.msra.gmra.mrb[2].mxu1 %v564_v55 }
 0x2ea   :  { %v727_v56 = vpop.f32.mrb[2].mxu1 }
 0x2eb   :  { %v728_v57 = vpop.f32.mrb[3].mxu1 }
 0x2ec   :  { %v729_v58 = vadd.f32 %v728_v57, %v727_v56 }
 0x2ee   :  { %v675_v31 = vadd.f32 %v729_v58, %v693_v32 }
 0x2f0   :  { %v694_v34 = vmul.f32 -1.442695, %v675_v31 }
 0x2f2   :  { %921 = vpow2.f32 %v694_v34 }
 0x2fc   :  { %v922_v59 = vpop.eup %921 }
 0x2fd   :  { %v679_v60 = vadd.f32 1.0, %v922_v59 }
 0x2ff   :  { %923 = vrcp.f32 %v679_v60 }
 0x309   :  { %v924_v61 = vpop.eup %923 }
 0x30a   :  { %683 = vst.msk [vmem:[%s1153_s7] sm:$0xff] %vm682_vm7, %v924_v61 }
 0x30b   :  { %688 = vsyncpa [#allocation4], 1 }
 0x30c   :  { %689 = vsyncpa [#allocation6], 1 }
 0x30d   :  { %690 = vsyncpa [#allocation9], 1 }

</bundles_post_ra>
